<compile_context>
chip_gen: v7x
topology: tpu7x:2x2x1
jax: 0.10.0
libtpu: 0.0.40
codegen_flags: <defaults>
</compile_context>

<pallas_src>
import functools

import jax
import jax.numpy as jnp
from jax.experimental import pallas as pl
from jax.experimental.pallas import tpu as pltpu


def text_encoder_kernel(ids_ref, emb_ref, w_ref, b_ref, o_ref, acc_ref, *,
                        matmul_dtype):
    k = pl.program_id(1)
    nk = pl.num_programs(1)
    TM, S = ids_ref.shape
    TV, E = emb_ref.shape

    @pl.when(k == 0)
    def _init():
        acc_ref[...] = jnp.zeros_like(acc_ref)

    # Token ids relative to this vocab tile; ids outside the tile match nothing.
    rel = ids_ref[...] - k * TV                                      # (TM, S) int32

    # Per-row token counts for this vocab tile: integer accumulate of compare
    # masks over the (small, static) S loop, single hoisted iota, no 1/S scale
    # here (folded onto the pooled result at finalize time).
    vocab_iota = jax.lax.broadcasted_iota(jnp.int32, (TM, TV), 1)    # (TM, TV)
    counts = jnp.zeros((TM, TV), dtype=jnp.int32)
    for s in range(S):                                               # S static & small
        counts = counts + (rel[:, s:s + 1] == vocab_iota).astype(jnp.int32)

    # Fused gather + sum-pool for this vocab chunk; accumulate across k tiles.
    # Counts are exact small integers, so a bf16 matmul_dtype is lossless on
    # the counts operand (only the table is quantized).
    acc_ref[...] += jnp.dot(counts.astype(matmul_dtype),
                            emb_ref[...].astype(matmul_dtype),
                            preferred_element_type=jnp.float32)      # (TM, E)

    @pl.when(k == nk - 1)
    def _finalize():
        pooled = acc_ref[...] * jnp.float32(1.0 / S)                 # mean over seq
        out = jnp.dot(pooled, w_ref[...],
                      preferred_element_type=jnp.float32) + b_ref[...]
        o_ref[...] = out.astype(o_ref.dtype)


def _round_up(x, m):
    return ((x + m - 1) // m) * m


def text_encoder_forward(input_ids, emb_table, fc_w_t, fc_b, *,
                         tm=None, tv=None, matmul_dtype=jnp.float32):
    B, S = input_ids.shape
    V, E = emb_table.shape
    out_dim = fc_w_t.shape[1]

    # --- batch (M) tile --------------------------------------------------
    # Tiny batches round up to the f32 sublane tile (8).  Otherwise start at
    # 256 (fills the MXU height) and halve until the "parallel" batch axis has
    # >= 2 grid steps so both v7x TensorCores get work (no effect v5e/v6e).
    if tm is None:
        if B <= 8:
            tm = 8
        else:
            tm = 256
            while tm > 8 and pl.cdiv(B, tm) < 2:
                tm //= 2
    b_pad = _round_up(B, tm)
    if b_pad != B:
        input_ids = jnp.pad(input_ids, ((0, b_pad - B), (0, 0)))

    # --- vocab (K / reduction) tile ---------------------------------------
    # Keep the (tm, tv) counts working set small enough to stay vreg-resident;
    # the table streams through VMEM in (tv, E) tiles so VMEM use is O(tile),
    # not O(V).
    if tv is None:
        tv = min(512, _round_up(V, 8))
    v_pad = _round_up(V, tv)
    if v_pad != V:
        emb_table = jnp.pad(emb_table, ((0, v_pad - V), (0, 0)))

    grid = (b_pad // tm, v_pad // tv)

    kernel = functools.partial(text_encoder_kernel, matmul_dtype=matmul_dtype)

    out = pl.pallas_call(
        kernel,
        out_shape=jax.ShapeDtypeStruct((b_pad, out_dim), jnp.float32),
        grid=grid,
        in_specs=[
            pl.BlockSpec((tm, S), lambda i, k: (i, 0)),          # ids tile (pipelined)
            pl.BlockSpec((tv, E), lambda i, k: (k, 0)),          # emb table (streamed over K)
            pl.BlockSpec((E, out_dim), lambda i, k: (0, 0)),     # fc weight (resident)
            pl.BlockSpec((1, out_dim), lambda i, k: (0, 0)),     # fc bias   (resident)
        ],
        out_specs=pl.BlockSpec((tm, out_dim), lambda i, k: (i, 0)),
        scratch_shapes=[pltpu.VMEM((tm, E), jnp.float32)],       # pooled accumulator
        compiler_params=pltpu.CompilerParams(
            dimension_semantics=("parallel", "arbitrary"),
            vmem_limit_bytes=48 * 1024 * 1024,                   # headroom on v7x's 64 MiB
        ),
    )(input_ids, emb_table, fc_w_t, fc_b)
    return out[:B]


def init_params(key, vocab_size, embed_dim=128, out_dim=512):
    k_emb, k_w, k_b = jax.random.split(key, 3)
    # nn.Embedding default init: N(0, 1)
    emb_table = jax.random.normal(k_emb, (vocab_size, embed_dim), dtype=jnp.float32)
    # nn.Linear default init: U(-1/sqrt(fan_in), 1/sqrt(fan_in))
    bound = 1.0 / jnp.sqrt(jnp.float32(embed_dim))
    fc_w_t = jax.random.uniform(k_w, (embed_dim, out_dim),
                                minval=-bound, maxval=bound, dtype=jnp.float32)
    fc_b = jax.random.uniform(k_b, (1, out_dim),
                              minval=-bound, maxval=bound, dtype=jnp.float32)
    return emb_table, fc_w_t, fc_b


def reference_forward(input_ids, emb_table, fc_w_t, fc_b):
    embedded = jnp.take(emb_table, input_ids, axis=0)      # (B, S, E)
    pooled = embedded.mean(axis=1)                         # (B, E)
    return pooled @ fc_w_t + fc_b                          # (B, 512)


if __name__ == "__main__":
    key = jax.random.PRNGKey(0)
    k_ids, k_params = jax.random.split(key)

    VOCAB, EMBED, OUT = 64, 128, 512
    B, S = 2, 8

    input_ids = jax.random.randint(k_ids, (B, S), 0, VOCAB, dtype=jnp.int32)
    emb_table, fc_w_t, fc_b = init_params(k_params, VOCAB, EMBED, OUT)

    # tv=32 forces two vocab-reduction grid steps so the accumulator
    # (init / accumulate / finalize) path is exercised at demo sizes.
    out = text_encoder_forward(input_ids, emb_table, fc_w_t, fc_b, tv=32)
    out = jax.block_until_ready(out)

    ref = reference_forward(input_ids, emb_table, fc_w_t, fc_b)
    assert out.shape == (B, OUT)
    assert jnp.allclose(out, ref, atol=1e-4, rtol=1e-4)

    print("KERNEL_OK")
</pallas_src>

<mosaic_0001>
module attributes {stable_mosaic.version = 11 : i64} {
  func.func @text_encoder_kernel(%arg0: i32, %arg1: i32, %arg2: memref<8x8xi32, #tpu.memory_space<vmem>>, %arg3: memref<32x128xf32, #tpu.memory_space<vmem>>, %arg4: memref<128x512xf32, #tpu.memory_space<vmem>>, %arg5: memref<1x512xf32, #tpu.memory_space<vmem>>, %arg6: memref<8x512xf32, #tpu.memory_space<vmem>>, %arg7: memref<8x128xf32, #tpu.memory_space<vmem>>) attributes {dimension_semantics = [#tpu.dimension_semantics<parallel>, #tpu.dimension_semantics<arbitrary>], iteration_bounds = array<i64: 1, 2>, scalar_prefetch = 0 : i64, scratch_operands = 1 : i64, tpu.core_type = #tpu.core_type<tc>, window_params = [{transform_indices = @transform_0, window_bounds = array<i64: 8, 8>}, {transform_indices = @transform_1, window_bounds = array<i64: 32, 128>}, {pipeline_mode = #tpu.pipeline_mode<synchronous>, transform_indices = @transform_2, window_bounds = array<i64: 128, 512>}, {pipeline_mode = #tpu.pipeline_mode<synchronous>, transform_indices = @transform_3, window_bounds = array<i64: 1, 512>}, {transform_indices = @transform_4, window_bounds = array<i64: 8, 512>}]} {
    %c0_i32 = arith.constant 0 : i32
    %0 = arith.cmpi eq, %arg1, %c0_i32 : i32
    %1 = arith.extui %0 : i1 to i32
    %c0_i32_0 = arith.constant 0 : i32
    %2 = arith.cmpi ne, %1, %c0_i32_0 : i32
    scf.if %2 {
      %cst_10 = arith.constant 0.000000e+00 : f32
      %58 = vector.broadcast %cst_10 : f32 to vector<8x128xf32>
      %c0_11 = arith.constant 0 : index
      %c0_12 = arith.constant 0 : index
      %59 = vector.load %arg7[%c0_11, %c0_12] : memref<8x128xf32, #tpu.memory_space<vmem>>, vector<8x128xf32>
      tpu.vector_store %arg7[%c0_11, %c0_12], %58 {strides = array<i32>} : memref<8x128xf32, #tpu.memory_space<vmem>>, vector<8x128xf32>,
    } else {
    }
    %c0 = arith.constant 0 : index
    %c0_1 = arith.constant 0 : index
    %3 = vector.load %arg2[%c0, %c0_1] : memref<8x8xi32, #tpu.memory_space<vmem>>, vector<8x8xi32>
    %c32_i32 = arith.constant 32 : i32
    %4 = arith.muli %arg1, %c32_i32 : i32
    %5 = vector.broadcast %4 : i32 to vector<8x8xi32>
    %6 = arith.subi %3, %5 : vector<8x8xi32>
    %7 = tpu.iota {dimensions = array<i32: 1>} : vector<8x32xi32>
    %c0_i32_2 = arith.constant 0 : i32
    %8 = vector.broadcast %c0_i32_2 : i32 to vector<8x32xi32>
    %9 = vector.extract_strided_slice %6 {offsets = [0, 0], sizes = [8, 1], strides = [1, 1]} : vector<8x8xi32> to vector<8x1xi32>
    %10 = vector.broadcast %9 : vector<8x1xi32> to vector<8x32xi32>
    %11 = arith.cmpi eq, %10, %7 : vector<8x32xi32>
    %12 = arith.extui %11 : vector<8x32xi1> to vector<8x32xi32>
    %13 = arith.addi %8, %12 : vector<8x32xi32>
    %14 = vector.extract_strided_slice %6 {offsets = [0, 1], sizes = [8, 1], strides = [1, 1]} : vector<8x8xi32> to vector<8x1xi32>
    %15 = vector.broadcast %14 : vector<8x1xi32> to vector<8x32xi32>
    %16 = arith.cmpi eq, %15, %7 : vector<8x32xi32>
    %17 = arith.extui %16 : vector<8x32xi1> to vector<8x32xi32>
    %18 = arith.addi %13, %17 : vector<8x32xi32>
    %19 = vector.extract_strided_slice %6 {offsets = [0, 2], sizes = [8, 1], strides = [1, 1]} : vector<8x8xi32> to vector<8x1xi32>
    %20 = vector.broadcast %19 : vector<8x1xi32> to vector<8x32xi32>
    %21 = arith.cmpi eq, %20, %7 : vector<8x32xi32>
    %22 = arith.extui %21 : vector<8x32xi1> to vector<8x32xi32>
    %23 = arith.addi %18, %22 : vector<8x32xi32>
    %24 = vector.extract_strided_slice %6 {offsets = [0, 3], sizes = [8, 1], strides = [1, 1]} : vector<8x8xi32> to vector<8x1xi32>
    %25 = vector.broadcast %24 : vector<8x1xi32> to vector<8x32xi32>
    %26 = arith.cmpi eq, %25, %7 : vector<8x32xi32>
    %27 = arith.extui %26 : vector<8x32xi1> to vector<8x32xi32>
    %28 = arith.addi %23, %27 : vector<8x32xi32>
    %29 = vector.extract_strided_slice %6 {offsets = [0, 4], sizes = [8, 1], strides = [1, 1]} : vector<8x8xi32> to vector<8x1xi32>
    %30 = vector.broadcast %29 : vector<8x1xi32> to vector<8x32xi32>
    %31 = arith.cmpi eq, %30, %7 : vector<8x32xi32>
    %32 = arith.extui %31 : vector<8x32xi1> to vector<8x32xi32>
    %33 = arith.addi %28, %32 : vector<8x32xi32>
    %34 = vector.extract_strided_slice %6 {offsets = [0, 5], sizes = [8, 1], strides = [1, 1]} : vector<8x8xi32> to vector<8x1xi32>
    %35 = vector.broadcast %34 : vector<8x1xi32> to vector<8x32xi32>
    %36 = arith.cmpi eq, %35, %7 : vector<8x32xi32>
    %37 = arith.extui %36 : vector<8x32xi1> to vector<8x32xi32>
    %38 = arith.addi %33, %37 : vector<8x32xi32>
    %39 = vector.extract_strided_slice %6 {offsets = [0, 6], sizes = [8, 1], strides = [1, 1]} : vector<8x8xi32> to vector<8x1xi32>
    %40 = vector.broadcast %39 : vector<8x1xi32> to vector<8x32xi32>
    %41 = arith.cmpi eq, %40, %7 : vector<8x32xi32>
    %42 = arith.extui %41 : vector<8x32xi1> to vector<8x32xi32>
    %43 = arith.addi %38, %42 : vector<8x32xi32>
    %44 = vector.extract_strided_slice %6 {offsets = [0, 7], sizes = [8, 1], strides = [1, 1]} : vector<8x8xi32> to vector<8x1xi32>
    %45 = vector.broadcast %44 : vector<8x1xi32> to vector<8x32xi32>
    %46 = arith.cmpi eq, %45, %7 : vector<8x32xi32>
    %47 = arith.extui %46 : vector<8x32xi1> to vector<8x32xi32>
    %48 = arith.addi %43, %47 : vector<8x32xi32>
    %c0_3 = arith.constant 0 : index
    %c0_4 = arith.constant 0 : index
    %49 = vector.load %arg7[%c0_3, %c0_4] : memref<8x128xf32, #tpu.memory_space<vmem>>, vector<8x128xf32>
    %50 = arith.sitofp %48 : vector<8x32xi32> to vector<8x32xf32>
    %c0_5 = arith.constant 0 : index
    %c0_6 = arith.constant 0 : index
    %51 = vector.load %arg3[%c0_5, %c0_6] : memref<32x128xf32, #tpu.memory_space<vmem>>, vector<32x128xf32>
    %cst = arith.constant dense<0.000000e+00> : vector<8x128xf32>
    %52 = tpu.matmul %50, %51, %cst {dimension_numbers = #tpu.dot_dimension_numbers<[1], [0], [0], [1], [0, 0, 1, 1], [], []>} : vector<8x32xf32>, vector<32x128xf32>, vector<8x128xf32> -> vector<8x128xf32>
    %53 = arith.addf %49, %52 : vector<8x128xf32>
    %c0_7 = arith.constant 0 : index
    %c0_8 = arith.constant 0 : index
    %54 = vector.load %arg7[%c0_7, %c0_8] : memref<8x128xf32, #tpu.memory_space<vmem>>, vector<8x128xf32>
    tpu.vector_store %arg7[%c0_7, %c0_8], %53 {strides = array<i32>} : memref<8x128xf32, #tpu.memory_space<vmem>>, vector<8x128xf32>,
    %c1_i32 = arith.constant 1 : i32
    %55 = arith.cmpi eq, %arg1, %c1_i32 : i32
    %56 = arith.extui %55 : i1 to i32
    %c0_i32_9 = arith.constant 0 : i32
    %57 = arith.cmpi ne, %56, %c0_i32_9 : i32
    scf.if %57 {
      %c0_10 = arith.constant 0 : index
      %c0_11 = arith.constant 0 : index
      %58 = vector.load %arg7[%c0_10, %c0_11] : memref<8x128xf32, #tpu.memory_space<vmem>>, vector<8x128xf32>
      %cst_12 = arith.constant 1.250000e-01 : f32
      %59 = vector.broadcast %cst_12 : f32 to vector<8x128xf32>
      %60 = arith.mulf %58, %59 : vector<8x128xf32>
      %c0_13 = arith.constant 0 : index
      %c0_14 = arith.constant 0 : index
      %61 = vector.load %arg4[%c0_13, %c0_14] : memref<128x512xf32, #tpu.memory_space<vmem>>, vector<128x512xf32>
      %cst_15 = arith.constant dense<0.000000e+00> : vector<8x512xf32>
      %62 = tpu.matmul %60, %61, %cst_15 {dimension_numbers = #tpu.dot_dimension_numbers<[1], [0], [0], [1], [0, 0, 1, 1], [], []>} : vector<8x128xf32>, vector<128x512xf32>, vector<8x512xf32> -> vector<8x512xf32>
      %c0_16 = arith.constant 0 : index
      %c0_17 = arith.constant 0 : index
      %63 = vector.load %arg5[%c0_16, %c0_17] : memref<1x512xf32, #tpu.memory_space<vmem>>, vector<1x512xf32>
      %64 = vector.broadcast %63 : vector<1x512xf32> to vector<8x512xf32>
      %65 = arith.addf %62, %64 : vector<8x512xf32>
      %c0_18 = arith.constant 0 : index
      %c0_19 = arith.constant 0 : index
      %66 = vector.load %arg6[%c0_18, %c0_19] : memref<8x512xf32, #tpu.memory_space<vmem>>, vector<8x512xf32>
      tpu.vector_store %arg6[%c0_18, %c0_19], %65 {strides = array<i32>} : memref<8x512xf32, #tpu.memory_space<vmem>>, vector<8x512xf32>,
    } else {
    }
    return
  }
  func.func @transform_0(%arg0: i32, %arg1: i32) -> (i32, i32) {
    %c0_i32 = arith.constant 0 : i32
    %c0_i32_0 = arith.constant 0 : i32
    return %arg0, %c0_i32 : i32, i32
  }
  func.func @transform_1(%arg0: i32, %arg1: i32) -> (i32, i32) {
    %c0_i32 = arith.constant 0 : i32
    %c0_i32_0 = arith.constant 0 : i32
    return %arg1, %c0_i32 : i32, i32
  }
  func.func @transform_2(%arg0: i32, %arg1: i32) -> (i32, i32) {
    %c0_i32 = arith.constant 0 : i32
    %c0_i32_0 = arith.constant 0 : i32
    %c0_i32_1 = arith.constant 0 : i32
    return %c0_i32, %c0_i32_0 : i32, i32
  }
  func.func @transform_3(%arg0: i32, %arg1: i32) -> (i32, i32) {
    %c0_i32 = arith.constant 0 : i32
    %c0_i32_0 = arith.constant 0 : i32
    %c0_i32_1 = arith.constant 0 : i32
    return %c0_i32, %c0_i32_0 : i32, i32
  }
  func.func @transform_4(%arg0: i32, %arg1: i32) -> (i32, i32) {
    %c0_i32 = arith.constant 0 : i32
    %c0_i32_0 = arith.constant 0 : i32
    return %arg0, %c0_i32 : i32, i32
  }
}

</mosaic_0001>

<bundles_post_ra>
// kernel: tpu_custom_call.1
= control target key start
LH: loop header
LB: loop body
LE: loop exit
PB: predicated region body
PF: predicated region fallthrough
CT: control target
= control target key end

     0   :  { %9 = vsyncpa [#allocation4], 0  ;;  %s1396_s0 = inlined_call_operand.hbm [shape: s32[8,8], index: 0, kind: input, shape index: {}]   ;;  %s1397_s1 = inlined_call_operand.hbm [shape: f32[64,128], index: 1, kind: input, shape index: {}]   ;;  %s1398_s2 = inlined_call_operand.hbm [shape: f32[128,512], index: 2, kind: input, shape index: {}]   ;;  %s1399_s3 = inlined_call_operand.vmem [shape: f32[1,512], index: 3, kind: input, shape index: {}]   ;;  %s1400_s4 = inlined_call_operand.hbm [shape: f32[8,512], index: 4, kind: output, shape index: {}]  }
   0x1   :  { %10 = vsyncpa [#allocation7], 0 }
   0x2   :  { %12 = vsyncpa [#allocation7 + $0x1], 0 }
   0x3   :  { %13 = vsyncpa [#allocation5], 0  ;;  %s1166_s15 = smov 0   ;;  %s1168_s16 = smov 0  }
   0x4   :  { %s1170_s17 = smov 0   ;;  %s1172_s18 = smov 0  }
   0x5   :  { %s1174_s19 = smov 0   ;;  %s1176_s20 = smov 0  }
   0x6 LB: > { %s1195_s21 = sadd.s32 4294967295, %s1118_s20   ;;  %p71_p0 = scmp.ne.s32.totalorder %s1106_s17, %s1102_s16  ;;  %s1118_s20 = sphi %s1176_s20, %s19_s20   ;;  %s1114_s19 = sphi %s1174_s19, %s1420_s19   ;;  %s1110_s18 = sphi %s1172_s18, %s1419_s18   ;;  %s1106_s17 = sphi %s1170_s17, %s1418_s17   ;;  %s1102_s16 = sphi %s1168_s16, %s1417_s16   ;;  %s1098_s15 = sphi %s1166_s15, %s1416_s15  }
   0x7   : > { %p72_p1 = scmp.eq.s32.totalorder %s1118_s20, 0  ;;  %p77_p2 = scmp.ne.s32.totalorder %s1102_s16, %s1098_s15 }
   0x8   : > { %p1401_p3 = scmp.eq.s32.totalorder %s1195_s21, 0  ;;  %p729_p4 = scmp.ge.s32.totalorder %s1118_s20, 1 }
   0x9   : > { %p73_p5 = por %p72_p1, %p71_p0  ;;  %p156_p6 = scmp.lt.s32.totalorder %s1118_s20, 3 }
   0xa   : > { %p1206_p7 = por %p1401_p3, %p77_p2  ;;  %s1120_s24 = smov [#allocation8]  }
   0xb   : > { %p1210_p8 = pnand %p729_p4, %p156_p6  ;;  %s181_s25 = sshll.u32 %s1120_s24, 4  ;;  %s182_s25 = int_to_ptr.vmem [resolvable:$true] %s181_s25 }
   0xc   : > { %s1405_s22 = scalar_select %p1206_p7, 1, 0 }
   0xd   : > { %s1406_s23 = scalar_select %p1210_p8, 1, 0 }
   0xe   : > { %p849_p9 = pneg %p1210_p8  ;;  %p862_p11 = scmp.lt.s32.totalorder %s1118_s20, 2 }
   0xf   : > { %s944_s30 = scalar_lea.hbm %s1398_s2, 8192 }
  0x10   : > { %p1218_p10 = pnand %p849_p9, %p1401_p3  ;;  %p1223_p12 = pnand %p862_p11, %p73_p5 }
  0x11   : > { %p945_p13 = scmp.ne.s32.totalorder %s1398_s2, %s944_s30  ;;  %p951_p4 = scmp.lt.u32.totalorder %s944_s30, %s1398_s2 }
  0x12   : > { %s1408_s27 = scalar_select %p1223_p12, 1, 0 }
  0x13   : > { %p946_p0 = pneg %p1218_p10 }
  0x15   : > { %p947_p1 = pnand %p946_p0, %p945_p13 }
  0x17   : > { %p948_p2 = pneg %p947_p1 }
  0x19   : > { %p953_p5 = pnand %p951_p4, %p948_p2 }
  0x1b   : > { %956 = shalt.err (!%p953_p5)
}
  0x1c   : > { %s957_s9 = scalar_lea.vmem %s182_s25, 8192  ;;  %p965_p3 = scmp.lt.s32.totalorder %s182_s25, %s182_s25 }
  0x1d   : > { %p958_p6 = scmp.ne.s32.totalorder %s182_s25, %s957_s9  ;;  %p966_p7 = scmp.lt.s32.totalorder %s957_s9, %s957_s9 }
  0x1f   : > { %p960_p9 = pnand %p958_p6, %p946_p0  ;;  %p967_p8 = por %p966_p7, %p965_p3 }
  0x21   : > { %p961_p11 = pneg %p960_p9 }
  0x23   : > { %p968_p12 = pnand %p967_p8, %p961_p11 }
  0x25   : > { %971 = shalt.err (!%p968_p12)
}
  0x26   : > { %s1121_s10 = smov 512   ;;  %s1122_s11 = smov 32  }
  0x27   : > { %855 = dma.hbm_to_vmem [thread:$0]  (!%p1218_p10), %s1398_s2, 8192, %s182_s25, [#allocation7], %s1121_s10, %s1121_s10, %s1122_s11  }
  0x28   : > { %s1123_s14 = smov [#allocation3]   ;;  %s972_s29 = scalar_lea.hbm %s1396_s0, 128 }
  0x29   : > { %s171_s15 = sshll.u32 %s1123_s14, 4  ;;  %p973_p3 = scmp.ne.s32.totalorder %s1396_s0, %s972_s29  ;;  %s172_s15 = int_to_ptr.vmem [resolvable:$true] %s171_s15 }
  0x2a   : > { %p979_p12 = scmp.lt.u32.totalorder %s972_s29, %s1396_s0 }
  0x2b   : > { %p975_p7 = pnand %p973_p3, %p946_p0 }
  0x2d   : > { %p976_p8 = pneg %p975_p7 }
  0x2f   : > { %p981_p13 = pnand %p979_p12, %p976_p8 }
  0x31   : > { %984 = shalt.err (!%p981_p13)
}
  0x32   : > { %s985_s25 = scalar_lea.vmem %s172_s15, 128  ;;  %p993_p5 = scmp.lt.s32.totalorder %s172_s15, %s172_s15 }
  0x33   : > { %p986_p1 = scmp.ne.s32.totalorder %s172_s15, %s985_s25  ;;  %p994_p6 = scmp.lt.s32.totalorder %s985_s25, %s985_s25 }
  0x35   : > { %p988_p2 = pnand %p986_p1, %p946_p0  ;;  %p995_p9 = por %p994_p6, %p993_p5 }
  0x37   : > { %p989_p4 = pneg %p988_p2 }
  0x39   : > { %p996_p11 = pnand %p995_p9, %p989_p4 }
  0x3b   : > { %999 = shalt.err (!%p996_p11)
}
  0x3c   : > { %852 = dma.hbm_to_vmem [thread:$0]  (!%p1218_p10), %s1396_s0, 128, %s172_s15, [#allocation4]  }
  0x3d   : > { %s28_s10 = sadd.s32 1, %s1114_s19  ;;  %s64_s11 = sadd.s32 1, %s1106_s17 }
  0x3e   : > { %p29_p0 = scmp.ge.s32.totalorder %s28_s10, 2  ;;  %s198_s12 = sand.u32 1, %s1118_s20  }
  0x3f   : > { %s200_s13 = sand.u32 1, %s1106_s17   ;;  %s748_s14 = sshll.u32 %s1114_s19, 9 }
  0x40   : > { %s1422_s10 = smov (%p29_p0, %s28_s10), 0  ;;  %s733_s26 = sshll.u32 %s200_s13, 5 }
  0x41   : > { %s61_s24 = ssub.s32 %s1114_s19, %s1422_s10  ;;  %s1281_s30 = scalar_lea.hbm %s1397_s1, %s748_s14 }
  0x42   : > { %p62_p3 = scmp.eq.s32.totalorder %s61_s24, 0  ;;  %s202_s15 = scalar_lea.vmem [#allocation6], %s733_s26 }
  0x43   : > { %s209_s5 = sshll.u32 %s202_s15, 4  ;;  %s1288_s7 = scalar_lea.sflag [#allocation7], %s198_s12  ;;  %s1286_s5 = int_to_ptr.vmem [resolvable:$true] %s209_s5 }
  0x44   : > { %s1284_s6 = scalar_select %p62_p3, %s1106_s17, %s64_s11  }
  0x45   : > { %s1000_s25 = scalar_lea.hbm %s1281_s30, 512  ;;  %p1409_p7 = scmp.ne.s32.totalorder %s1408_s27, 0 }
  0x46   : > { %p1001_p10 = scmp.ne.s32.totalorder %s1281_s30, %s1000_s25  ;;  %s1005_s13 = scalar_lea.hbm %s1397_s1, 1024 }
  0x47   : > { %p1002_p8 = pneg %p1409_p7  ;;  %p1006_p1 = scmp.lt.u32.totalorder %s1281_s30, %s1397_s1 }
  0x48   : > { %p1007_p2 = scmp.lt.u32.totalorder %s1005_s13, %s1000_s25  ;;  %p1009_p5 = scmp.lt.u32.totalorder %s1000_s25, %s1281_s30 }
  0x49   : > { %p1003_p12 = pnand %p1002_p8, %p1001_p10 }
  0x4a   : > { %p1008_p4 = por %p1007_p2, %p1006_p1 }
  0x4b   : > { %p1004_p13 = pneg %p1003_p12 }
  0x4c   : > { %p1010_p6 = por %p1009_p5, %p1008_p4 }
  0x4e   : > { %p1011_p9 = pnand %p1010_p6, %p1004_p13 }
  0x50   : > { %1014 = shalt.err (!%p1011_p9)
}
  0x51   : > { %s1015_s11 = scalar_lea.vmem %s1286_s5, 512  ;;  %s1124_s12 = smov [#allocation6]  }
  0x52   : > { %p1016_p11 = scmp.ne.s32.totalorder %s1286_s5, %s1015_s11  ;;  %s1020_s24 = sshll.u32 %s1124_s12, 4  ;;  %s1021_s24 = int_to_ptr.vmem [resolvable:$false] %s1020_s24 }
  0x53   : > { %s1022_s28 = scalar_lea.vmem %s1021_s24, 1024  ;;  %p1023_p10 = scmp.lt.s32.totalorder %s1286_s5, %s1021_s24 }
  0x54   : > { %p1018_p0 = pnand %p1016_p11, %p1002_p8  ;;  %p1024_p12 = scmp.lt.s32.totalorder %s1022_s28, %s1015_s11 }
  0x56   : > { %p1019_p3 = pneg %p1018_p0  ;;  %p1025_p1 = por %p1024_p12, %p1023_p10 }
  0x58   : > { %p1026_p2 = pnand %p1025_p1, %p1019_p3 }
  0x5a   : > { %1029 = shalt.err (!%p1026_p2)
}
  0x5b   : > { %s1125_s29 = smov 128   ;;  %s1126_s15 = smov 8  }
  0x5c   : > { %859 = dma.hbm_to_vmem [thread:$0]  (!%p1409_p7), %s1281_s30, 512, %s1286_s5, %s1288_s7, %s1125_s29, %s1125_s29, %s1126_s15  }
  0x5d   : > { %p1410_p8 = scmp.ne.s32.totalorder %s1406_s23, 0 }
  0x5e   : > { %p1411_p13 = scmp.eq.s32.totalorder (!%p1410_p8), %s1195_s21, 0 }
  0x5f   : > { %221 = sbr.rel (%p1410_p8) target bundleno = 748 (0x2ec), region = 36 }
  0x66   : > { %1081 = dma.done.wait (%p1411_p13), [#allocation4], 128   ;;  %p1412_p4 = pmov %p1411_p13 }
  0x67   : > { %s227_s25 = sand.u32 1, %s1195_s21   ;;  %s229_s8 = sand.u32 1, %s1102_s16  }
  0x68   : > { %1083 = vsyncadd (%p1412_p4), [#allocation4], 4294967168  ;;  %s738_s9 = sshll.u32 %s229_s8, 5  ;;  %s228_s13 = scalar_lea.sflag [#allocation7], %s227_s25 }
  0x69   : > { %s1324_s26 = scalar_lea.vmem [#allocation6], %s738_s9  ;;  %p1413_p5 = scmp.ne.s32.totalorder %s1405_s22, 0 }
  0x6b   : > { %1085 = dma.done.wait (%p1413_p5), %s228_s13, 512  }
  0x6c   : > { %1087 = vsyncadd (%p1413_p5), %s228_s13, 4294966784  ;;  %p1414_p7 = pmov %p1412_p4 }
  0x6d   : > { %p1415_p6 = pmov %p1412_p4 }
  0x6e   : > { %1089 = dma.done.wait (%p1414_p7), [#allocation7], 8192  }
  0x6f   : > { %1091 = vsyncadd (%p1415_p6), [#allocation7], 4294959104  ;;  %p740_p9 = scmp.ne.s32.totalorder %s1110_s18, 0 }
  0x70   : > { %v1127_v0 = vmov (!%p740_p9), 0.0  }
  0x71   : > { %259 = sbr.rel (%p740_p9) target bundleno = 120 (0x78), region = 52  ;;  %260 = vst [vmem:[#allocation2] sm:$0xff] (!%p740_p9), %v1127_v0 }
  0x78 PF: > { %v261_v1 = vld [vmem:[#allocation3] sm:$0xff]  ;;  %s741_s23 = sshll.u32 %s1110_s18, 5  ;;  %v1128_v2 = vmov 2   ;;  %v1129_v3 = vmov 0   ;;  %v1130_v6 = vmov 3   ;;  %v1131_v7 = vmov 1  }
  0x79   : > { %937 = vset.pattern.permute.xlu1 %v1128_v2  ;;  %935 = vset.pattern.permute.xlu0 %v1129_v3  ;;  %v263_v4 = vstv %s741_s23  ;;  %v1132_v8 = vmov 4   ;;  %v1133_v9 = vmov 5   ;;  %v1134_v10 = vmov 6   ;;  %v316_v12 = vld [vmem:[%s1324_s26] sm:$0xff]  ;;  %v317_v13 = vld [vmem:[%s1324_s26 + $0x8] sm:$0xff]  ;;  %v318_v16 = vld [vmem:[%s1324_s26 + $0x10] sm:$0xff] }
  0x7a   : > { %v264_v5 = vsub.s32 %v261_v1, %v263_v4  ;;  %v1135_v11 = vmov 7   ;;  %v766_v14 = vpack.c.bf16 %v317_v13, %v316_v12  ;;  %v1136_v15 = vmov 0.0|0.0   ;;  %v319_v17 = vld [vmem:[%s1324_s26 + $0x18] sm:$0xff]  ;;  %v314_v46 = vld [vmem:[#allocation2] sm:$0xff]  ;;  %p743_p11 = scmp.ne.s32.totalorder %s1110_s18, 1 }
  0x7b   : > { %765 = vmatprep.subr.bf16.mxu0 %v1136_v15  ;;  %v769_v18 = vpack.c.bf16 %v319_v17, %v318_v16  ;;  %vm1137_vm0 = vmmov 0   ;;  %v1138_v19 = vmov 0.0   ;;  %v265_v20 = vlaneseq  ;;  %v403_v50 = vld [vmem:[#allocation8 + $0x8] sm:$0xff] (!%p743_p11)  ;;  %v405_v52 = vld [vmem:[#allocation8 + $0x18] sm:$0xff] (!%p743_p11)  ;;  %v402_v55 = vld [vmem:[#allocation8] sm:$0xff] (!%p743_p11) }
  0x7c   : > { %279 = vperm.xlu1 %937, %v264_v5   ;;  %268 = vperm.xlu0 %935, %v264_v5   ;;  %vm320_vm9 = vcmask 261120   ;;  %v407_v51 = vld [vmem:[#allocation8 + $0x28] sm:$0xff] (!%p743_p11)  ;;  %v409_v54 = vld [vmem:[#allocation8 + $0x38] sm:$0xff] (!%p743_p11)  ;;  %v406_v56 = vld [vmem:[#allocation8 + $0x20] sm:$0xff] (!%p743_p11)  ;;  %v1139_v57 = vmov (!%p743_p11), 0.0  }
  0x7d   : > { %767 = vmatpush3.bf16.msra.mxu0 %v766_v14  ;;  %762 = vmatprep.mubr.msk.f32.mxu0 %vm1137_vm0, %v1138_v19  ;;  %v266_v23 = vand.u32 127, %v265_v20  ;;  %v771_v53 = vpack.c.bf16 (!%p743_p11), %v407_v51, %v403_v50  ;;  %v803_v58 = vpack.c.bf16 (!%p743_p11), %v409_v54, %v405_v52  ;;  %v773_v59 = vpack.c.bf16 (!%p743_p11), %v406_v56, %v402_v55  ;;  %v404_v60 = vld [vmem:[#allocation8 + $0x10] sm:$0xff] (!%p743_p11)  ;;  %v411_v62 = vld [vmem:[#allocation8 + $0x48] sm:$0xff] (!%p743_p11)  ;;  %v413_v1 = vld [vmem:[#allocation8 + $0x58] sm:$0xff] (!%p743_p11) }
  0x7e   : > { %768 = vmatprep.subr.bf16.mxu0 %v1136_v15  ;;  %623 = vmatprep.mubr.f32.mxu1 (!%p743_p11), %v1139_v57  ;;  %v408_v61 = vld [vmem:[#allocation8 + $0x30] sm:$0xff] (!%p743_p11)  ;;  %v415_v0 = vld [vmem:[#allocation8 + $0x68] sm:$0xff] (!%p743_p11)  ;;  %v417_v2 = vld [vmem:[#allocation8 + $0x78] sm:$0xff] (!%p743_p11) }
  0x7f   : > { %v805_v63 = vpack.c.bf16 (!%p743_p11), %v408_v61, %v404_v60  ;;  %804 = vmatprep.subr.bf16.mxu1 (!%p743_p11), %v803_v58  ;;  %v807_v4 = vpack.c.bf16 (!%p743_p11), %v417_v2, %v413_v1  ;;  %v421_v14 = vld [vmem:[#allocation8 + $0x98] sm:$0xff] (!%p743_p11)  ;;  %v418_v16 = vld [vmem:[#allocation8 + $0x80] sm:$0xff] (!%p743_p11)  ;;  %v420_v19 = vld [vmem:[#allocation8 + $0x90] sm:$0xff] (!%p743_p11) }
  0x80   : > { %938 = vset.pattern.permute.xlu1 %v1130_v6  ;;  %936 = vset.pattern.permute.xlu0 %v1131_v7  ;;  %v414_v6 = vld [vmem:[#allocation8 + $0x60] sm:$0xff] (!%p743_p11)  ;;  %v412_v7 = vld [vmem:[#allocation8 + $0x50] sm:$0xff] (!%p743_p11)  ;;  %v425_v15 = vld [vmem:[#allocation8 + $0xb8] sm:$0xff] (!%p743_p11) }
  0x81   : > { %285 = vperm.xlu1 %938, %v264_v5   ;;  %273 = vperm.xlu0 %936, %v264_v5   ;;  %v811_v17 = vpack.c.bf16 (!%p743_p11), %v425_v15, %v421_v14  ;;  %v446_v54 = vld [vmem:[#allocation8 + $0x160] sm:$0xff] (!%p743_p11)  ;;  %v444_v55 = vld [vmem:[#allocation8 + $0x150] sm:$0xff] (!%p743_p11)  ;;  %v451_v58 = vld [vmem:[#allocation8 + $0x188] sm:$0xff] (!%p743_p11) }
  0x82   : > { %770 = vmatpush3.bf16.msra.mxu0 %v769_v18  ;;  %806 = vmatpush1.bf16.msra.mxu1 (!%p743_p11), %v805_v63  ;;  %v422_v18 = vld [vmem:[#allocation8 + $0xa0] sm:$0xff] (!%p743_p11)  ;;  %v453_v60 = vld [vmem:[#allocation8 + $0x198] sm:$0xff] (!%p743_p11) }
  0x83   : > { %772 = vmatprep.subr.bf16.mxu0 (!%p743_p11), %v771_v53  ;;  %808 = vmatprep.subr.bf16.mxu1 (!%p743_p11), %v807_v4  ;;  %v442_v53 = vld [vmem:[#allocation8 + $0x140] sm:$0xff] (!%p743_p11)  ;;  %v457_v61 = vld [vmem:[#allocation8 + $0x1b8] sm:$0xff] (!%p743_p11) }
  0x84   : > { %v450_v1 = vld [vmem:[#allocation8 + $0x180] sm:$0xff] (!%p743_p11)  ;;  %v827_v4 = vpack.c.bf16 (!%p743_p11), %v457_v61, %v453_v60 }
  0x85   : > { %939 = vset.pattern.permute.xlu1 %v1132_v8  ;;  %940 = vset.pattern.permute.xlu0 %v1133_v9  ;;  %v416_v9 = vld [vmem:[#allocation8 + $0x70] sm:$0xff] (!%p743_p11)  ;;  %v454_v2 = vld [vmem:[#allocation8 + $0x1a0] sm:$0xff] (!%p743_p11) }
  0x86   : > { %291 = vperm.xlu1 %939, %v264_v5   ;;  %297 = vperm.xlu0 %940, %v264_v5   ;;  %v809_v12 = vpack.c.bf16 (!%p743_p11), %v416_v9, %v412_v7  ;;  %v463_v7 = vld [vmem:[#allocation8 + $0x1e8] sm:$0xff] (!%p743_p11)  ;;  %v465_v9 = vld [vmem:[#allocation8 + $0x1f8] sm:$0xff] (!%p743_p11)  ;;  %v462_v14 = vld [vmem:[#allocation8 + $0x1e0] sm:$0xff] (!%p743_p11) }
  0x88   : > { %810 = vmatpush1.bf16.msra.mxu1 (!%p743_p11), %v809_v12 }
  0x89   : > { %812 = vmatprep.subr.bf16.mxu1 (!%p743_p11), %v811_v17  ;;  %v464_v17 = vld [vmem:[#allocation8 + $0x1f0] sm:$0xff] (!%p743_p11) }
  0x8a   : > { %941 = vset.pattern.permute.xlu1 %v1134_v10  ;;  %943 = vset.pattern.permute.xlu0 %v1135_v11  ;;  %v419_v10 = vld [vmem:[#allocation8 + $0x88] sm:$0xff] (!%p743_p11) }
  0x8b   : > { %303 = vperm.xlu1 %941, %v264_v5  }
  0x8f   : > { %942 = vset.pattern.permute.xlu1 %v1135_v11  ;;  %v423_v11 = vld [vmem:[#allocation8 + $0xa8] sm:$0xff] (!%p743_p11) }
  0x90   : > { %309 = vperm.xlu1 %942, %v264_v5   ;;  %v410_v5 = vld [vmem:[#allocation8 + $0x40] sm:$0xff] (!%p743_p11)  ;;  %v779_v13 = vpack.c.bf16 (!%p743_p11), %v423_v11, %v419_v10  ;;  %v797_v10 = vpack.c.bf16 (!%p743_p11), %v454_v2, %v450_v1 }
  0x91   : > { %v777_v8 = vpack.c.bf16 (!%p743_p11), %v414_v6, %v410_v5  ;;  %v456_v5 = vld [vmem:[#allocation8 + $0x1b0] sm:$0xff] (!%p743_p11)  ;;  %v459_v6 = vld [vmem:[#allocation8 + $0x1c8] sm:$0xff] (!%p743_p11) }
  0x92   : > { %v799_v12 = vpack.c.bf16 (!%p743_p11), %v463_v7, %v459_v6 }
  0xfb   : > { %v280_v21 = vpop.permute.xlu1 %279  ;;  %v269_v22 = vpop.permute.xlu0 %268 }
  0xfc   : > { %vm270_vm1 = vcmp.eq.s32.totalorder %v269_v22, %v266_v23  ;;  %vm281_vm2 = vcmp.eq.s32.totalorder %v280_v21, %v266_v23  ;;  %v424_v21 = vld [vmem:[#allocation8 + $0xb0] sm:$0xff] (!%p743_p11)  ;;  %v781_v22 = vpack.c.bf16 (!%p743_p11), %v422_v18, %v418_v16 }
  0xfd   : > { %v271_v26 = vsel %vm270_vm1, 1, %v1129_v3  ;;  %v282_v29 = vsel %vm281_vm2, 1, %v1129_v3  ;;  %v460_v16 = vld [vmem:[#allocation8 + $0x1d0] sm:$0xff] (!%p743_p11) }
 0x100   : > { %v286_v24 = vpop.permute.xlu1 %285  ;;  %v274_v25 = vpop.permute.xlu0 %273 }
 0x101   : > { %vm275_vm3 = vcmp.eq.s32.totalorder %v274_v25, %v266_v23  ;;  %vm287_vm4 = vcmp.eq.s32.totalorder %v286_v24, %v266_v23  ;;  %v431_v24 = vld [vmem:[#allocation8 + $0xe8] sm:$0xff] (!%p743_p11)  ;;  %v429_v25 = vld [vmem:[#allocation8 + $0xd8] sm:$0xff] (!%p743_p11) }
 0x102   : > { %v276_v27 = vsel %vm275_vm3, 1, %v1129_v3  ;;  %v288_v33 = vsel %vm287_vm4, 1, %v1129_v3 }
 0x103   : > { %v277_v28 = vadd.s32 %v276_v27, %v271_v26  ;;  %v813_v26 = vpack.c.bf16 (!%p743_p11), %v424_v21, %v420_v19  ;;  %v833_v21 = vpack.c.bf16 (!%p743_p11), %v464_v17, %v460_v16 }
 0x105   : > { %v283_v30 = vadd.s32 %v282_v29, %v277_v28  ;;  %v292_v31 = vpop.permute.xlu1 %291  ;;  %v298_v32 = vpop.permute.xlu0 %297  ;;  %v433_v28 = vld [vmem:[#allocation8 + $0xf8] sm:$0xff] (!%p743_p11)  ;;  %v426_v29 = vld [vmem:[#allocation8 + $0xc0] sm:$0xff] (!%p743_p11)  ;;  %814 = vmatpush1.bf16.msra.mxu1 (!%p743_p11), %v813_v26 }
 0x106   : > { %vm293_vm5 = vcmp.eq.s32.totalorder %v292_v31, %v266_v23  ;;  %vm299_vm6 = vcmp.eq.s32.totalorder %v298_v32, %v266_v23  ;;  %v815_v31 = vpack.c.bf16 (!%p743_p11), %v433_v28, %v429_v25  ;;  %v428_v32 = vld [vmem:[#allocation8 + $0xd0] sm:$0xff] (!%p743_p11) }
 0x107   : > { %v289_v34 = vadd.s32 %v288_v33, %v283_v30  ;;  %v294_v35 = vsel %vm293_vm5, 1, %v1129_v3  ;;  %v300_v37 = vsel %vm299_vm6, 1, %v1129_v3  ;;  %v430_v30 = vld [vmem:[#allocation8 + $0xe0] sm:$0xff] (!%p743_p11)  ;;  %v432_v33 = vld [vmem:[#allocation8 + $0xf0] sm:$0xff] (!%p743_p11) }
 0x108   : > { %816 = vmatprep.subr.bf16.mxu1 (!%p743_p11), %v815_v31  ;;  %v466_v25 = vld [vmem:[%s1399_s3] sm:$0xf] (!%p743_p11) }
 0x109   : > { %v295_v36 = vadd.s32 %v294_v35, %v289_v34  ;;  %v435_v34 = vld [vmem:[#allocation8 + $0x108] sm:$0xff] (!%p743_p11) }
 0x10a   : > { %v304_v38 = vpop.permute.xlu1 %303  ;;  %v439_v35 = vld [vmem:[#allocation8 + $0x128] sm:$0xff] (!%p743_p11) }
 0x10b   : > { %vm305_vm7 = vcmp.eq.s32.totalorder %v304_v38, %v266_v23  ;;  %v301_v39 = vadd.s32 %v300_v37, %v295_v36  ;;  %v437_v36 = vld [vmem:[#allocation8 + $0x118] sm:$0xff] (!%p743_p11)  ;;  %v785_v38 = vpack.c.bf16 (!%p743_p11), %v430_v30, %v426_v29 }
 0x10c   : > { %v306_v40 = vsel %vm305_vm7, 1, %v1129_v3  ;;  %v441_v37 = vld [vmem:[#allocation8 + $0x138] sm:$0xff] (!%p743_p11) }
 0x10d   : > { %v307_v42 = vadd.s32 %v306_v40, %v301_v39  ;;  %v817_v39 = vpack.c.bf16 (!%p743_p11), %v432_v33, %v428_v32  ;;  %v787_v40 = vpack.c.bf16 (!%p743_p11), %v439_v35, %v435_v34 }
 0x10f   : > { %v310_v41 = vpop.permute.xlu1 %309  ;;  %818 = vmatpush1.bf16.msra.mxu1 (!%p743_p11), %v817_v39 }
 0x110   : > { %vm311_vm8 = vcmp.eq.s32.totalorder %v310_v41, %v266_v23  ;;  %v427_v23 = vld [vmem:[#allocation8 + $0xc8] sm:$0xff] (!%p743_p11)  ;;  %v434_v41 = vld [vmem:[#allocation8 + $0x100] sm:$0xff] (!%p743_p11) }
 0x111   : > { %v312_v43 = vsel %vm311_vm8, 1, %v1129_v3  ;;  %v775_v3 = vpack.c.bf16 (!%p743_p11), %v415_v0, %v411_v62  ;;  %v783_v27 = vpack.c.bf16 (!%p743_p11), %v431_v24, %v427_v23  ;;  %v793_v62 = vpack.c.bf16 (!%p743_p11), %v446_v54, %v442_v53 }
 0x112   : > { %v313_v44 = vadd.s32 %v312_v43, %v307_v42  ;;  %v438_v42 = vld [vmem:[#allocation8 + $0x120] sm:$0xff] (!%p743_p11)  ;;  %v436_v43 = vld [vmem:[#allocation8 + $0x110] sm:$0xff] (!%p743_p11)  ;;  %v469_v23 = vshrl.u32 (!%p743_p11), %v265_v20, 7 }
 0x113   : > { %v789_v50 = vpack.c.bf16 (!%p743_p11), %v438_v42, %v434_v41 }
 0x114   : > { %v315_v45 = vcvt.s32.f32 %v313_v44  ;;  %v819_v44 = vpack.c.bf16 (!%p743_p11), %v441_v37, %v437_v36  ;;  %v470_v24 = vsub.s32 (!%p743_p11), 0, %v469_v23  ;;  %v478_v26 = vsub.s32 (!%p743_p11), 2, %v469_v23 }
 0x115   : > { %v482_v28 = vsub.s32 (!%p743_p11), 3, %v469_v23 }
 0x116   : > { %763 = vmatmul.mubr.msk.f32.vlgmr.msra.gmra.mrb[0].mxu0 %vm320_vm9, %v315_v45  ;;  %v440_v45 = vld [vmem:[#allocation8 + $0x130] sm:$0xff] (!%p743_p11)  ;;  %820 = vmatprep.subr.bf16.mxu1 (!%p743_p11), %v819_v44  ;;  %v471_v29 = vrot.slane (!%p743_p11), %v466_v25, %v470_v24  ;;  %v479_v30 = vrot.slane (!%p743_p11), %v466_v25, %v478_v26 }
 0x117   : > { %552 = vmatprep.mubr.f32.mxu0 (!%p743_p11), %v1139_v57  ;;  %774 = vmatpush1.bf16.msra.mxu0 (!%p743_p11), %v773_v59  ;;  %v821_v51 = vpack.c.bf16 (!%p743_p11), %v440_v45, %v436_v43  ;;  %v448_v57 = vld [vmem:[#allocation8 + $0x170] sm:$0xff] (!%p743_p11)  ;;  %v455_v59 = vld [vmem:[#allocation8 + $0x1a8] sm:$0xff] (!%p743_p11)  ;;  %v483_v32 = vrot.slane (!%p743_p11), %v466_v25, %v482_v28 }
 0x118   : > { %776 = vmatprep.subr.bf16.mxu0 (!%p743_p11), %v775_v3  ;;  %v825_v63 = vpack.c.bf16 (!%p743_p11), %v448_v57, %v444_v55  ;;  %v795_v0 = vpack.c.bf16 (!%p743_p11), %v455_v59, %v451_v58  ;;  %v452_v3 = vld [vmem:[#allocation8 + $0x190] sm:$0xff] (!%p743_p11) }
 0x119   : > { %822 = vmatpush1.bf16.msra.mxu1 (!%p743_p11), %v821_v51  ;;  %v829_v11 = vpack.c.bf16 (!%p743_p11), %v456_v5, %v452_v3 }
 0x11b   : > { %778 = vmatpush1.bf16.msra.mxu0 (!%p743_p11), %v777_v8  ;;  %v461_v8 = vld [vmem:[#allocation8 + $0x1d8] sm:$0xff] (!%p743_p11) }
 0x11c   : > { %780 = vmatprep.subr.bf16.mxu0 (!%p743_p11), %v779_v13  ;;  %v458_v13 = vld [vmem:[#allocation8 + $0x1c0] sm:$0xff] (!%p743_p11)  ;;  %v831_v15 = vpack.c.bf16 (!%p743_p11), %v465_v9, %v461_v8 }
 0x11d   : > { %v801_v18 = vpack.c.bf16 (!%p743_p11), %v462_v14, %v458_v13 }
 0x11f   : > { %782 = vmatpush1.bf16.msra.mxu0 (!%p743_p11), %v781_v22 }
 0x120   : > { %784 = vmatprep.subr.bf16.mxu0 (!%p743_p11), %v783_v27  ;;  %v474_v27 = vsub.s32 (!%p743_p11), 1, %v469_v23 }
 0x122   : > { %v475_v31 = vrot.slane (!%p743_p11), %v466_v25, %v474_v27 }
 0x123   : > { %786 = vmatpush1.bf16.msra.mxu0 (!%p743_p11), %v785_v38 }
 0x124   : > { %788 = vmatprep.subr.bf16.mxu0 (!%p743_p11), %v787_v40 }
 0x127   : > { %790 = vmatpush1.bf16.msra.mxu0 (!%p743_p11), %v789_v50 }
 0x1e6   : > { %399 = sbr.rel (%p743_p11) target bundleno = 723 (0x2d3), region = 56 }
 0x1e9   : > { %v390_v47 = vpop.f32.mrb[0].mxu0 }
 0x1ea   : > { %v394_v48 = vadd.f32 %v390_v47, %v314_v46  ;;  %v764_v49 = vpop.f32.mrb[1].mxu0  ;;  %v443_v46 = vld [vmem:[#allocation8 + $0x148] sm:$0xff] (!%p743_p11) }
 0x1eb   : > { %v447_v47 = vld [vmem:[#allocation8 + $0x168] sm:$0xff] (!%p743_p11)  ;;  %v449_v49 = vld [vmem:[#allocation8 + $0x178] sm:$0xff] (!%p743_p11) }
 0x1ec   : > { %395 = vst [vmem:[#allocation2] sm:$0xff] %v394_v48  ;;  %v445_v48 = vld [vmem:[#allocation8 + $0x158] sm:$0xff] (!%p743_p11)  ;;  %v791_v52 = vpack.c.bf16 (!%p743_p11), %v447_v47, %v443_v46 }
 0x1ed   : > { %v823_v56 = vpack.c.bf16 %v449_v49, %v445_v48 }
 0x1ee   : > { %792 = vmatprep.subr.bf16.mxu0 %v791_v52 }
 0x1ef   : > { %824 = vmatprep.subr.bf16.mxu1 %v823_v56  ;;  %794 = vmatpush1.bf16.msra.mxu0 %v793_v62 }
 0x1f0   : > { %826 = vmatpush1.bf16.msra.mxu1 %v825_v63  ;;  %796 = vmatprep.subr.bf16.mxu0 %v795_v0 }
 0x1f1   : > { %828 = vmatprep.subr.bf16.mxu1 %v827_v4 }
 0x1f3   : > { %798 = vmatpush1.bf16.msra.mxu0 %v797_v10  ;;  %v400_v19 = vld [vmem:[#allocation2] sm:$0xff] }
 0x1f4   : > { %830 = vmatpush1.bf16.msra.mxu1 %v829_v11  ;;  %800 = vmatprep.subr.bf16.mxu0 %v799_v12  ;;  %v401_v22 = vmul.f32 0.125, %v400_v19 }
 0x1f5   : > { %832 = vmatprep.subr.bf16.mxu1 %v831_v15 }
 0x1f7   : > { %802 = vmatpush1.bf16.msra.mxu0 %v801_v18 }
 0x1f8   : > { %834 = vmatpush1.bf16.msra.mxu1 %v833_v21 }
 0x1fa   : > { %553 = vmatmul.mubr.f32.vlgmr.msra.gmra.mrb[0].mxu0 %v401_v22 }
 0x1fb   : > { %624 = vmatmul.mubr.f32.vlgmr.msra.gmra.mrb[0].mxu1 %v401_v22 }
 0x2cd   : > { %v554_v33 = vpop.f32.mrb[0].mxu0 }
 0x2ce   : > { %v555_v34 = vadd.f32 %v554_v33, %v471_v29  ;;  %v625_v35 = vpop.f32.mrb[0].mxu1  ;;  %v556_v36 = vpop.f32.mrb[1].mxu0 }
 0x2cf   : > { %v626_v37 = vadd.f32 %v625_v35, %v479_v30  ;;  %v557_v38 = vadd.f32 %v556_v36, %v475_v31  ;;  %v627_v39 = vpop.f32.mrb[1].mxu1 }
 0x2d0   : > { %630 = vst [vmem:[#allocation9] sm:$0xff] %v555_v34  ;;  %v628_v20 = vadd.f32 %v627_v39, %v483_v32 }
 0x2d1   : > { %632 = vst [vmem:[#allocation9 + $0x10] sm:$0xff] %v626_v37  ;;  %631 = vst [vmem:[#allocation9 + $0x8] sm:$0xff] %v557_v38 }
 0x2d2   : > { %633 = vst [vmem:[#allocation9 + $0x18] sm:$0xff] %v628_v20 }
 0x2d3 PF: > { %p865_p0 = scmp.eq.s32.totalorder %s1195_s21, 1  ;;  %s1140_s27 = smov [#allocation9]  }
 0x2d4   : > { %s644_s30 = sshll.u32 %s1140_s27, 4  ;;  %s645_s30 = int_to_ptr.vmem [resolvable:$true] %s644_s30 }
 0x2d5   : > { %s1030_s5 = scalar_lea.vmem %s645_s30, 512  ;;  %p1037_p1 = scmp.lt.s32.totalorder %s645_s30, %s645_s30 }
 0x2d6   : > { %p1031_p3 = scmp.ne.s32.totalorder %s645_s30, %s1030_s5  ;;  %p1038_p2 = scmp.lt.s32.totalorder %s1030_s5, %s1030_s5 }
 0x2d8   : > { %p1032_p10 = pnand %p1031_p3, %p865_p0  ;;  %p1039_p8 = por %p1038_p2, %p1037_p1 }
 0x2da   : > { %p1033_p12 = pneg %p1032_p10 }
 0x2dc   : > { %p1040_p13 = pnand %p1039_p8, %p1033_p12 }
 0x2de   : > { %1043 = shalt.err (!%p1040_p13)
}
 0x2df   : > { %s1044_s11 = scalar_lea.hbm %s1400_s4, 512 }
 0x2e0   : > { %p1045_p4 = scmp.ne.s32.totalorder %s1400_s4, %s1044_s11  ;;  %p1050_p6 = scmp.lt.u32.totalorder %s1044_s11, %s1400_s4 }
 0x2e2   : > { %p1046_p5 = pnand %p1045_p4, %p865_p0 }
 0x2e4   : > { %p1047_p7 = pneg %p1046_p5 }
 0x2e6   : > { %p1052_p9 = pnand %p1050_p6, %p1047_p7 }
 0x2e8   : > { %1055 = shalt.err (!%p1052_p9)
}
 0x2e9   : > { %846 = dma.vmem_to_hbm [thread:$0]  (%p865_p0), %s645_s30, 512, %s1400_s4, [#allocation5]  }
 0x2ea   : > { %1093 = dma.done.wait (%p865_p0), [#allocation5], 512  }
 0x2eb   : > { %1095 = vsyncadd (%p865_p0), [#allocation5], 4294966784 }
 0x2ec PF: > { %s19_s20 = sadd.s32 1, %s1118_s20   ;;  %s1416_s15 = smov %s1102_s16 }
 0x2ed   : > { %p16_p11 = scmp.ge.s32.totalorder %s19_s20, 4   ;;  %s1417_s16 = smov %s1106_s17 }
 0x2ee   : > { %s1418_s17 = smov %s1284_s6  ;;  %s1419_s18 = smov %s1114_s19 }
 0x2ef   : > { %s1420_s19 = smov %s1422_s10  ;;  %18 = sbr.rel (!%p16_p11) target bundleno = 6 (0x6), region = 92 }
 0x2f6   :  { %657 = vsyncpa [#allocation4], 1 }
 0x2f7   :  { %659 = vsyncpa [#allocation4 + $0x1], 1 }
 0x2f8   :  { %660 = vsyncpa [#allocation7], 1 }
 0x2f9   :  { %662 = vsyncpa [#allocation7 + $0x1], 1 }
 0x2fa   :  { %663 = vsyncpa [#allocation5], 1 }
 0x2fb   :  { %665 = vsyncpa [#allocation5 + $0x1], 1 }

</bundles_post_ra>
